<compile_context>
chip_gen: v6e
topology: v6e:2x2x1
jax: 0.10.0
libtpu: 0.0.40
codegen_flags: <defaults>
</compile_context>

<pallas_src>
import jax
import jax.numpy as jnp
from jax import lax
from jax.experimental import pallas as pl
from jax.experimental.pallas import tpu as pltpu

LANES = 128
SUBLANES = 8
PAD_UNIT = SUBLANES * LANES  # 1024 elements


def _elem_loss(p, g):
    """Per-element focal-loss term and positive indicator (both f32).

    Matches the reference exactly:
      log(p)   * (1-p)^2              where g == 1
      log(1-p) * p^2 * (1-g)^4        where g <  1
      0                               otherwise (g > 1)
    """
    is_pos = g == 1.0
    omp = 1.0 - p
    # One EUP log per element instead of two.
    lx = jnp.log(jnp.where(is_pos, p, omp))
    omg = 1.0 - g
    omg2 = omg * omg
    neg_w = (p * p) * (omg2 * omg2)          # p^2 * (1-g)^4
    pos_w = omp * omp                        # (1-p)^2
    w = jnp.where(is_pos, pos_w, jnp.where(g < 1.0, neg_w, 0.0))
    return lx * w, is_pos.astype(jnp.float32)


def _make_focal_kernel(total, tile_rows, tiles_per_core):
    """Build the reduction kernel; `total`, `tile_rows`, `tiles_per_core` are
    static Python ints closed over by the kernel (no scalar prefetch needed)."""
    tile_elems = tile_rows * LANES
    n_sub = tile_rows // SUBLANES  # tile_rows is always a multiple of 8

    def _partial(loss, posf):
        # (tile_rows, 128) -> (8, 128) partial sums.  The reshape is
        # (8,128)-tile aligned (layout-preserving); the axis-0 sum lowers to a
        # VALU add tree across vregs.
        ls = loss.reshape(n_sub, SUBLANES, LANES).sum(axis=0)
        ps = posf.reshape(n_sub, SUBLANES, LANES).sum(axis=0)
        return ls, ps

    def kernel(pred_ref, gt_ref, loss_out_ref, npos_out_ref):
        c = pl.program_id(0)          # TensorCore shard ("parallel" axis)
        i = pl.program_id(1)          # reduction step ("arbitrary" axis)

        # Zero this core's resident output/accumulator blocks once.
        @pl.when(i == 0)
        def _():
            loss_out_ref[...] = jnp.zeros_like(loss_out_ref)
            npos_out_ref[...] = jnp.zeros_like(npos_out_ref)

        tile_idx = c * tiles_per_core + i
        remaining = total - tile_idx * tile_elems

        # Fast path: every element of this tile is a real element.
        @pl.when(remaining >= tile_elems)
        def _():
            p = pred_ref[...].astype(jnp.float32)
            g = gt_ref[...].astype(jnp.float32)
            loss, posf = _elem_loss(p, g)
            ls, ps = _partial(loss, posf)
            loss_out_ref[...] += ls
            npos_out_ref[...] += ps

        # Tail / phantom tile: mask out elements past `total`.  Invalid lanes
        # get safe substitutes (p=0.5 keeps the log finite; g=2.0 makes both
        # the pos and neg branches select 0), so wrapper padding and partial
        # block garbage contribute exactly zero.
        @pl.when(remaining < tile_elems)
        def _():
            row = lax.broadcasted_iota(jnp.int32, (tile_rows, LANES), 0)
            lane = lax.broadcasted_iota(jnp.int32, (tile_rows, LANES), 1)
            valid = (row * LANES + lane) < remaining
            p = jnp.where(valid, pred_ref[...].astype(jnp.float32), 0.5)
            g = jnp.where(valid, gt_ref[...].astype(jnp.float32), 2.0)
            loss, posf = _elem_loss(p, g)
            ls, ps = _partial(loss, posf)
            loss_out_ref[...] += ls
            npos_out_ref[...] += ps

    return kernel


def focal_loss(pred, gt, *, tile_rows=4096):
    """Pallas equivalent of FocalLoss.forward(pred, gt) for NCHW inputs."""
    assert pred.shape == gt.shape
    total = int(pred.size)

    pred_flat = pred.reshape(-1)
    gt_flat = gt.reshape(-1)

    # Pad (<= 1023 elements) so the slab is a whole number of (8,128) tiles;
    # padded elements are masked out in-kernel.
    if total % PAD_UNIT:
        pad = PAD_UNIT - total % PAD_UNIT
        pred_flat = jnp.pad(pred_flat, (0, pad))
        gt_flat = jnp.pad(gt_flat, (0, pad))

    rows = pred_flat.shape[0] // LANES
    pred2 = pred_flat.reshape(rows, LANES)
    gt2 = gt_flat.reshape(rows, LANES)

    # Big tile (amortize per-step overhead), clamped to the input and kept a
    # multiple of 8 sublanes.  4096 rows -> 2 MiB f32 per input tile; two
    # inputs double-buffered = 8 MiB, inside every generation's scoped VMEM.
    tile_rows = max(SUBLANES, min(tile_rows, rows))
    tile_rows = (tile_rows // SUBLANES) * SUBLANES
    n_blocks = -(-rows // tile_rows)

    # Shard the tile range across (up to) two TensorCores via a leading
    # "parallel" grid axis; each core owns its own output block.
    num_cores = 2 if n_blocks >= 2 else 1
    tiles_per_core = -(-n_blocks // num_cores)

    def row_block(c, i):
        # Clamp phantom steps (odd tile counts) to the last real block; the
        # in-kernel mask zeroes their contribution.
        return (jnp.minimum(c * tiles_per_core + i, n_blocks - 1), 0)

    in_spec = pl.BlockSpec((tile_rows, LANES), row_block)
    out_spec = pl.BlockSpec((SUBLANES, LANES), lambda c, i: (c, 0))
    out_shape = jax.ShapeDtypeStruct((num_cores * SUBLANES, LANES),
                                     jnp.float32)

    kernel = _make_focal_kernel(total, tile_rows, tiles_per_core)

    loss_parts, npos_parts = pl.pallas_call(
        kernel,
        out_shape=(out_shape, out_shape),
        grid_spec=pltpu.PrefetchScalarGridSpec(
            num_scalar_prefetch=0,
            grid=(num_cores, tiles_per_core),
            in_specs=[in_spec, in_spec],
            out_specs=[out_spec, out_spec],
        ),
        compiler_params=pltpu.CompilerParams(
            dimension_semantics=("parallel", "arbitrary")),
    )(pred2, gt2)

    loss_sum = jnp.sum(loss_parts)
    num_pos = jnp.sum(npos_parts)
    # pos contribution is zero whenever num_pos == 0, so this single formula
    # reproduces both branches of the PyTorch reference exactly.
    return -loss_sum / jnp.maximum(num_pos, 1.0)


def _focal_loss_ref(pred, gt):
    """Pure-JAX reference mirroring the PyTorch _neg_loss exactly."""
    pred = pred.astype(jnp.float32)
    gt = gt.astype(jnp.float32)
    pos_inds = (gt == 1.0).astype(jnp.float32)
    neg_inds = (gt < 1.0).astype(jnp.float32)
    neg_weights = (1.0 - gt) ** 4
    pos_loss = jnp.log(pred) * (1.0 - pred) ** 2 * pos_inds
    neg_loss = jnp.log(1.0 - pred) * pred ** 2 * neg_weights * neg_inds
    num_pos = pos_inds.sum()
    pos_loss = pos_loss.sum()
    neg_loss = neg_loss.sum()
    return jnp.where(num_pos == 0.0, -neg_loss,
                     -(pos_loss + neg_loss) / jnp.maximum(num_pos, 1.0))


if __name__ == "__main__":
    key = jax.random.PRNGKey(0)
    k1, k2 = jax.random.split(key)

    B, C, H, W = 2, 4, 16, 16  # NCHW, as in the PyTorch module

    # pred: heatmap-like values strictly in (0, 1)
    pred = jax.nn.sigmoid(jax.random.normal(k1, (B, C, H, W), jnp.float32))
    # gt: Gaussian-splatted targets in [0, 1] with some exact 1.0 peaks
    gt = jax.random.uniform(k2, (B, C, H, W), jnp.float32)
    peaks = gt > 0.97
    gt = jnp.where(peaks, 1.0, gt * 0.95)

    loss = focal_loss(pred, gt)
    jax.block_until_ready(loss)

    ref = _focal_loss_ref(pred, gt)
    assert jnp.allclose(loss, ref, rtol=1e-5, atol=1e-5), (loss, ref)

    print("KERNEL_OK")
</pallas_src>

<mosaic_0001>
module attributes {stable_mosaic.version = 11 : i64} {
  func.func @kernel(%arg0: i32, %arg1: i32, %arg2: memref<16x128xf32, #tpu.memory_space<vmem>>, %arg3: memref<16x128xf32, #tpu.memory_space<vmem>>, %arg4: memref<8x128xf32, #tpu.memory_space<vmem>>, %arg5: memref<8x128xf32, #tpu.memory_space<vmem>>) attributes {dimension_semantics = [#tpu.dimension_semantics<parallel>, #tpu.dimension_semantics<arbitrary>], iteration_bounds = array<i64: 1, 1>, scalar_prefetch = 0 : i64, scratch_operands = 0 : i64, tpu.core_type = #tpu.core_type<tc>, window_params = [{transform_indices = @transform_0, window_bounds = array<i64: 16, 128>}, {transform_indices = @transform_1, window_bounds = array<i64: 16, 128>}, {transform_indices = @transform_2, window_bounds = array<i64: 8, 128>}, {transform_indices = @transform_3, window_bounds = array<i64: 8, 128>}]} {
    %c0_i32 = arith.constant 0 : i32
    %0 = arith.cmpi eq, %arg1, %c0_i32 : i32
    %1 = arith.extui %0 : i1 to i32
    %c0_i32_0 = arith.constant 0 : i32
    %2 = arith.cmpi ne, %1, %c0_i32_0 : i32
    scf.if %2 {
      %cst = arith.constant 0.000000e+00 : f32
      %13 = vector.broadcast %cst : f32 to vector<8x128xf32>
      %c0 = arith.constant 0 : index
      %c0_6 = arith.constant 0 : index
      %14 = vector.load %arg4[%c0, %c0_6] : memref<8x128xf32, #tpu.memory_space<vmem>>, vector<8x128xf32>
      tpu.vector_store %arg4[%c0, %c0_6], %13 {strides = array<i32>} : memref<8x128xf32, #tpu.memory_space<vmem>>, vector<8x128xf32>,
      %cst_7 = arith.constant 0.000000e+00 : f32
      %15 = vector.broadcast %cst_7 : f32 to vector<8x128xf32>
      %c0_8 = arith.constant 0 : index
      %c0_9 = arith.constant 0 : index
      %16 = vector.load %arg5[%c0_8, %c0_9] : memref<8x128xf32, #tpu.memory_space<vmem>>, vector<8x128xf32>
      tpu.vector_store %arg5[%c0_8, %c0_9], %15 {strides = array<i32>} : memref<8x128xf32, #tpu.memory_space<vmem>>, vector<8x128xf32>,
    } else {
    }
    %c1_i32 = arith.constant 1 : i32
    %3 = arith.muli %arg0, %c1_i32 : i32
    %4 = arith.addi %3, %arg1 : i32
    %c2048_i32 = arith.constant 2048 : i32
    %5 = arith.muli %4, %c2048_i32 : i32
    %c2048_i32_1 = arith.constant 2048 : i32
    %6 = arith.subi %c2048_i32_1, %5 : i32
    %c2048_i32_2 = arith.constant 2048 : i32
    %7 = arith.cmpi sge, %6, %c2048_i32_2 : i32
    %8 = arith.extui %7 : i1 to i32
    %c0_i32_3 = arith.constant 0 : i32
    %9 = arith.cmpi ne, %8, %c0_i32_3 : i32
    scf.if %9 {
      %c0 = arith.constant 0 : index
      %c0_6 = arith.constant 0 : index
      %13 = vector.load %arg2[%c0, %c0_6] : memref<16x128xf32, #tpu.memory_space<vmem>>, vector<16x128xf32>
      %c0_7 = arith.constant 0 : index
      %c0_8 = arith.constant 0 : index
      %14 = vector.load %arg3[%c0_7, %c0_8] : memref<16x128xf32, #tpu.memory_space<vmem>>, vector<16x128xf32>
      %cst = arith.constant 1.000000e+00 : f32
      %15 = vector.broadcast %cst : f32 to vector<16x128xf32>
      %16 = arith.cmpf oeq, %14, %15 : vector<16x128xf32>
      %cst_9 = arith.constant 1.000000e+00 : f32
      %17 = vector.broadcast %cst_9 : f32 to vector<16x128xf32>
      %18 = arith.subf %17, %13 : vector<16x128xf32>
      %19 = arith.select %16, %13, %18 : vector<16x128xi1>, vector<16x128xf32>
      %20 = math.log %19 : vector<16x128xf32>
      %cst_10 = arith.constant 1.000000e+00 : f32
      %21 = vector.broadcast %cst_10 : f32 to vector<16x128xf32>
      %22 = arith.subf %21, %14 : vector<16x128xf32>
      %23 = arith.mulf %22, %22 : vector<16x128xf32>
      %24 = arith.mulf %13, %13 : vector<16x128xf32>
      %25 = arith.mulf %23, %23 : vector<16x128xf32>
      %26 = arith.mulf %24, %25 : vector<16x128xf32>
      %27 = arith.mulf %18, %18 : vector<16x128xf32>
      %cst_11 = arith.constant 1.000000e+00 : f32
      %28 = vector.broadcast %cst_11 : f32 to vector<16x128xf32>
      %29 = arith.cmpf olt, %14, %28 : vector<16x128xf32>
      %cst_12 = arith.constant 0.000000e+00 : f32
      %30 = vector.broadcast %cst_12 : f32 to vector<16x128xf32>
      %31 = arith.select %29, %26, %30 : vector<16x128xi1>, vector<16x128xf32>
      %32 = arith.select %16, %27, %31 : vector<16x128xi1>, vector<16x128xf32>
      %33 = arith.mulf %20, %32 : vector<16x128xf32>
      %34 = arith.extui %16 : vector<16x128xi1> to vector<16x128xi32>
      %35 = arith.sitofp %34 : vector<16x128xi32> to vector<16x128xf32>
      %36 = vector.shape_cast %33 : vector<16x128xf32> to vector<2x8x128xf32>
      %cst_13 = arith.constant dense<0.000000e+00> : vector<8x128xf32>
      %37 = vector.multi_reduction <add>, %36, %cst_13 [0] : vector<2x8x128xf32> to vector<8x128xf32>
      %38 = vector.shape_cast %35 : vector<16x128xf32> to vector<2x8x128xf32>
      %cst_14 = arith.constant dense<0.000000e+00> : vector<8x128xf32>
      %39 = vector.multi_reduction <add>, %38, %cst_14 [0] : vector<2x8x128xf32> to vector<8x128xf32>
      %c0_15 = arith.constant 0 : index
      %c0_16 = arith.constant 0 : index
      %40 = vector.load %arg4[%c0_15, %c0_16] : memref<8x128xf32, #tpu.memory_space<vmem>>, vector<8x128xf32>
      %41 = arith.addf %40, %37 : vector<8x128xf32>
      %c0_17 = arith.constant 0 : index
      %c0_18 = arith.constant 0 : index
      %42 = vector.load %arg4[%c0_17, %c0_18] : memref<8x128xf32, #tpu.memory_space<vmem>>, vector<8x128xf32>
      tpu.vector_store %arg4[%c0_17, %c0_18], %41 {strides = array<i32>} : memref<8x128xf32, #tpu.memory_space<vmem>>, vector<8x128xf32>,
      %c0_19 = arith.constant 0 : index
      %c0_20 = arith.constant 0 : index
      %43 = vector.load %arg5[%c0_19, %c0_20] : memref<8x128xf32, #tpu.memory_space<vmem>>, vector<8x128xf32>
      %44 = arith.addf %43, %39 : vector<8x128xf32>
      %c0_21 = arith.constant 0 : index
      %c0_22 = arith.constant 0 : index
      %45 = vector.load %arg5[%c0_21, %c0_22] : memref<8x128xf32, #tpu.memory_space<vmem>>, vector<8x128xf32>
      tpu.vector_store %arg5[%c0_21, %c0_22], %44 {strides = array<i32>} : memref<8x128xf32, #tpu.memory_space<vmem>>, vector<8x128xf32>,
    } else {
    }
    %c2048_i32_4 = arith.constant 2048 : i32
    %10 = arith.cmpi slt, %6, %c2048_i32_4 : i32
    %11 = arith.extui %10 : i1 to i32
    %c0_i32_5 = arith.constant 0 : i32
    %12 = arith.cmpi ne, %11, %c0_i32_5 : i32
    scf.if %12 {
      %13 = tpu.iota {dimensions = array<i32: 0>} : vector<16x128xi32>
      %14 = tpu.iota {dimensions = array<i32: 1>} : vector<16x128xi32>
      %c128_i32 = arith.constant 128 : i32
      %15 = vector.broadcast %c128_i32 : i32 to vector<16x128xi32>
      %16 = arith.muli %13, %15 : vector<16x128xi32>
      %17 = arith.addi %16, %14 : vector<16x128xi32>
      %18 = vector.broadcast %6 : i32 to vector<16x128xi32>
      %19 = arith.cmpi slt, %17, %18 : vector<16x128xi32>
      %c0 = arith.constant 0 : index
      %c0_6 = arith.constant 0 : index
      %20 = vector.load %arg2[%c0, %c0_6] : memref<16x128xf32, #tpu.memory_space<vmem>>, vector<16x128xf32>
      %cst = arith.constant 5.000000e-01 : f32
      %21 = vector.broadcast %cst : f32 to vector<16x128xf32>
      %22 = arith.select %19, %20, %21 : vector<16x128xi1>, vector<16x128xf32>
      %c0_7 = arith.constant 0 : index
      %c0_8 = arith.constant 0 : index
      %23 = vector.load %arg3[%c0_7, %c0_8] : memref<16x128xf32, #tpu.memory_space<vmem>>, vector<16x128xf32>
      %cst_9 = arith.constant 2.000000e+00 : f32
      %24 = vector.broadcast %cst_9 : f32 to vector<16x128xf32>
      %25 = arith.select %19, %23, %24 : vector<16x128xi1>, vector<16x128xf32>
      %cst_10 = arith.constant 1.000000e+00 : f32
      %26 = vector.broadcast %cst_10 : f32 to vector<16x128xf32>
      %27 = arith.cmpf oeq, %25, %26 : vector<16x128xf32>
      %cst_11 = arith.constant 1.000000e+00 : f32
      %28 = vector.broadcast %cst_11 : f32 to vector<16x128xf32>
      %29 = arith.subf %28, %22 : vector<16x128xf32>
      %30 = arith.select %27, %22, %29 : vector<16x128xi1>, vector<16x128xf32>
      %31 = math.log %30 : vector<16x128xf32>
      %cst_12 = arith.constant 1.000000e+00 : f32
      %32 = vector.broadcast %cst_12 : f32 to vector<16x128xf32>
      %33 = arith.subf %32, %25 : vector<16x128xf32>
      %34 = arith.mulf %33, %33 : vector<16x128xf32>
      %35 = arith.mulf %22, %22 : vector<16x128xf32>
      %36 = arith.mulf %34, %34 : vector<16x128xf32>
      %37 = arith.mulf %35, %36 : vector<16x128xf32>
      %38 = arith.mulf %29, %29 : vector<16x128xf32>
      %cst_13 = arith.constant 1.000000e+00 : f32
      %39 = vector.broadcast %cst_13 : f32 to vector<16x128xf32>
      %40 = arith.cmpf olt, %25, %39 : vector<16x128xf32>
      %cst_14 = arith.constant 0.000000e+00 : f32
      %41 = vector.broadcast %cst_14 : f32 to vector<16x128xf32>
      %42 = arith.select %40, %37, %41 : vector<16x128xi1>, vector<16x128xf32>
      %43 = arith.select %27, %38, %42 : vector<16x128xi1>, vector<16x128xf32>
      %44 = arith.mulf %31, %43 : vector<16x128xf32>
      %45 = arith.extui %27 : vector<16x128xi1> to vector<16x128xi32>
      %46 = arith.sitofp %45 : vector<16x128xi32> to vector<16x128xf32>
      %47 = vector.shape_cast %44 : vector<16x128xf32> to vector<2x8x128xf32>
      %cst_15 = arith.constant dense<0.000000e+00> : vector<8x128xf32>
      %48 = vector.multi_reduction <add>, %47, %cst_15 [0] : vector<2x8x128xf32> to vector<8x128xf32>
      %49 = vector.shape_cast %46 : vector<16x128xf32> to vector<2x8x128xf32>
      %cst_16 = arith.constant dense<0.000000e+00> : vector<8x128xf32>
      %50 = vector.multi_reduction <add>, %49, %cst_16 [0] : vector<2x8x128xf32> to vector<8x128xf32>
      %c0_17 = arith.constant 0 : index
      %c0_18 = arith.constant 0 : index
      %51 = vector.load %arg4[%c0_17, %c0_18] : memref<8x128xf32, #tpu.memory_space<vmem>>, vector<8x128xf32>
      %52 = arith.addf %51, %48 : vector<8x128xf32>
      %c0_19 = arith.constant 0 : index
      %c0_20 = arith.constant 0 : index
      %53 = vector.load %arg4[%c0_19, %c0_20] : memref<8x128xf32, #tpu.memory_space<vmem>>, vector<8x128xf32>
      tpu.vector_store %arg4[%c0_19, %c0_20], %52 {strides = array<i32>} : memref<8x128xf32, #tpu.memory_space<vmem>>, vector<8x128xf32>,
      %c0_21 = arith.constant 0 : index
      %c0_22 = arith.constant 0 : index
      %54 = vector.load %arg5[%c0_21, %c0_22] : memref<8x128xf32, #tpu.memory_space<vmem>>, vector<8x128xf32>
      %55 = arith.addf %54, %50 : vector<8x128xf32>
      %c0_23 = arith.constant 0 : index
      %c0_24 = arith.constant 0 : index
      %56 = vector.load %arg5[%c0_23, %c0_24] : memref<8x128xf32, #tpu.memory_space<vmem>>, vector<8x128xf32>
      tpu.vector_store %arg5[%c0_23, %c0_24], %55 {strides = array<i32>} : memref<8x128xf32, #tpu.memory_space<vmem>>, vector<8x128xf32>,
    } else {
    }
    return
  }
  func.func @transform_0(%arg0: i32, %arg1: i32) -> (i32, i32) {
    %c1_i32 = arith.constant 1 : i32
    %0 = arith.muli %arg0, %c1_i32 : i32
    %1 = arith.addi %0, %arg1 : i32
    %c0_i32 = arith.constant 0 : i32
    %2 = arith.minsi %1, %c0_i32 : i32
    %c0_i32_0 = arith.constant 0 : i32
    %c0_i32_1 = arith.constant 0 : i32
    return %2, %c0_i32_0 : i32, i32
  }
  func.func @transform_1(%arg0: i32, %arg1: i32) -> (i32, i32) {
    %c1_i32 = arith.constant 1 : i32
    %0 = arith.muli %arg0, %c1_i32 : i32
    %1 = arith.addi %0, %arg1 : i32
    %c0_i32 = arith.constant 0 : i32
    %2 = arith.minsi %1, %c0_i32 : i32
    %c0_i32_0 = arith.constant 0 : i32
    %c0_i32_1 = arith.constant 0 : i32
    return %2, %c0_i32_0 : i32, i32
  }
  func.func @transform_2(%arg0: i32, %arg1: i32) -> (i32, i32) {
    %c0_i32 = arith.constant 0 : i32
    %c0_i32_0 = arith.constant 0 : i32
    return %arg0, %c0_i32 : i32, i32
  }
  func.func @transform_3(%arg0: i32, %arg1: i32) -> (i32, i32) {
    %c0_i32 = arith.constant 0 : i32
    %c0_i32_0 = arith.constant 0 : i32
    return %arg0, %c0_i32 : i32, i32
  }
}

</mosaic_0001>

<bundles_post_ra>
// kernel: tpu_custom_call.1
= control target key start
LH: loop header
LB: loop body
LE: loop exit
PB: predicated region body
PF: predicated region fallthrough
CT: control target
= control target key end

     0   :  { %9 = vsyncpa [#allocation3], 0  ;;  %s370_s0 = inlined_call_operand.hbm [shape: f32[16,128], index: 0, kind: input, shape index: {}]   ;;  %s371_s1 = inlined_call_operand.hbm [shape: f32[16,128], index: 1, kind: input, shape index: {}]   ;;  %s372_s2 = inlined_call_operand.hbm [shape: f32[8,128], index: 2, kind: output, shape index: {0}]   ;;  %s373_s3 = inlined_call_operand.hbm [shape: f32[8,128], index: 3, kind: output, shape index: {1}]  }
   0x1   :  { %10 = vsyncpa [#allocation6], 0 }
   0x2   :  { %11 = vsyncpa [#allocation4], 0 }
   0x3   :  { %12 = vsyncpa [#allocation9], 0  ;;  %s325_s12 = smov [#allocation2]  }
   0x4   :  { %s24_s13 = sshll.u32 %s325_s12, 4  ;;  %s25_s13 = int_to_ptr.vmem [resolvable:$true] %s24_s13 }
   0x5   :  { %s245_s14 = scalar_lea.vmem %s25_s13, 256  ;;  %p250_p1 = scmp.lt.s32.totalorder %s25_s13, %s25_s13 }
   0x6   :  { %p246_p0 = scmp.ne.s32.totalorder %s25_s13, %s245_s14  ;;  %p251_p2 = scmp.lt.s32.totalorder %s245_s14, %s245_s14 }
   0x8   :  { %p252_p3 = por %p251_p2, %p250_p1 }
   0xa   :  { %p253_p4 = pnand %p252_p3, %p246_p0 }
   0xc   :  { %256 = shalt.err (!%p253_p4)
}
   0xd   :  { %s326_s15 = smov 128   ;;  %s327_s16 = smov 8  }
   0xe   :  { %30 = dma.hbm_to_vmem [thread:$0]  %s370_s0, 256, %s25_s13, [#allocation3], %s326_s15, %s326_s15, %s327_s16  }
   0xf   :  { %s328_s19 = smov [#allocation5]  }
  0x10   :  { %s42_s20 = sshll.u32 %s328_s19, 4  ;;  %s43_s20 = int_to_ptr.vmem [resolvable:$true] %s42_s20 }
  0x11   :  { %s265_s21 = scalar_lea.vmem %s43_s20, 256  ;;  %p270_p6 = scmp.lt.s32.totalorder %s43_s20, %s43_s20 }
  0x12   :  { %p266_p5 = scmp.ne.s32.totalorder %s43_s20, %s265_s21  ;;  %p271_p7 = scmp.lt.s32.totalorder %s265_s21, %s265_s21 }
  0x14   :  { %p272_p8 = por %p271_p7, %p270_p6 }
  0x16   :  { %p273_p9 = pnand %p272_p8, %p266_p5 }
  0x18   :  { %276 = shalt.err (!%p273_p9)
}
  0x19   :  { %48 = dma.hbm_to_vmem [thread:$0]  %s371_s1, 256, %s43_s20, [#allocation6], %s326_s15, %s326_s15, %s327_s16  }
  0x1a   :  { %317 = dma.done.wait [#allocation3], 256  }
  0x1b   :  { %318 = vsyncadd [#allocation3], 4294967040 }
  0x1c   :  { %319 = dma.done.wait [#allocation6], 256  }
  0x1d   :  { %320 = vsyncadd [#allocation6], 4294967040  ;;  %v76_v0 = vld [vmem:[#allocation2] sm:$0xff]  ;;  %v77_v1 = vld [vmem:[#allocation2 + $0x8] sm:$0xff]  ;;  %v329_v12 = vmov 0.0   ;;  %s330_s0 = smov [#allocation8]  }
  0x1e   :  { %v78_v2 = vld [vmem:[#allocation5] sm:$0xff]  ;;  %v79_v3 = vld [vmem:[#allocation5 + $0x8] sm:$0xff]  ;;  %v82_v4 = vsub.f32 1.0, %v76_v0  ;;  %v83_v5 = vsub.f32 1.0, %v77_v1  ;;  %v94_v14 = vmul.f32 %v76_v0, %v76_v0  ;;  %s204_s1 = sshll.u32 %s330_s0, 4  ;;  %v95_v17 = vmul.f32 %v77_v1, %v77_v1  ;;  %s205_s1 = int_to_ptr.vmem [resolvable:$true] %s204_s1 }
  0x1f   :  { %vm80_vm0 = vcmp.eq.f32.partialorder %v78_v2, 1.0  ;;  %v90_v6 = vsub.f32 1.0, %v78_v2  ;;  %vm81_vm1 = vcmp.eq.f32.partialorder %v79_v3, 1.0  ;;  %v91_v7 = vsub.f32 1.0, %v79_v3  ;;  %s277_s24 = scalar_lea.vmem %s205_s1, 128  ;;  %p282_p11 = scmp.lt.s32.totalorder %s205_s1, %s205_s1 }
  0x20   :  { %v84_v8 = vsel %vm80_vm0, %v76_v0, %v82_v4  ;;  %v85_v9 = vsel %vm81_vm1, %v77_v1, %v83_v5  ;;  %v222_v13 = vsel %vm80_vm0, 1.0, %v329_v12  ;;  %v223_v16 = vsel %vm81_vm1, 1.0, %v329_v12  ;;  %p278_p10 = scmp.ne.s32.totalorder %s205_s1, %s277_s24  ;;  %p283_p12 = scmp.lt.s32.totalorder %s277_s24, %s277_s24 }
  0x21   :  { %v92_v10 = vmul.f32 %v90_v6, %v90_v6  ;;  %233 = vlog2.f32 %v84_v8  ;;  %v93_v11 = vmul.f32 %v91_v7, %v91_v7  ;;  %v115_v19 = vadd.f32 %v223_v16, %v222_v13 }
  0x22   :  { %235 = vlog2.f32 %v85_v9  ;;  %vm102_vm2 = vcmp.lt.f32.partialorder %v78_v2, 1.0  ;;  %vm103_vm3 = vcmp.lt.f32.partialorder %v79_v3, 1.0  ;;  %p284_p13 = por %p283_p12, %p282_p11 }
  0x23   :  { %v96_v15 = vmul.f32 %v92_v10, %v92_v10  ;;  %v97_v18 = vmul.f32 %v93_v11, %v93_v11  ;;  %121 = vst [vmem:[#allocation8] sm:$0xff] %v115_v19 }
  0x24   :  { %p285_p0 = pnand %p284_p13, %p278_p10 }
  0x25   :  { %v98_v20 = vmul.f32 %v96_v15, %v94_v14  ;;  %v99_v21 = vmul.f32 %v97_v18, %v95_v17 }
  0x26   :  { %288 = shalt.err (!%p285_p0)
}
  0x27   :  { %207 = dma.vmem_to_hbm [thread:$0]  %s205_s1, 128, %s373_s3, [#allocation9]   ;;  %v100_v22 = vmul.f32 %v82_v4, %v82_v4  ;;  %v101_v23 = vmul.f32 %v83_v5, %v83_v5  ;;  %v104_v24 = vsel %vm102_vm2, %v98_v20, 0.0  ;;  %v105_v25 = vsel %vm103_vm3, %v99_v21, 0.0 }
  0x28   :  { %s331_s27 = smov [#allocation7]  }
  0x29   :  { %v106_v27 = vsel %vm80_vm0, %v100_v22, %v104_v24  ;;  %v107_v30 = vsel %vm81_vm1, %v101_v23, %v105_v25  ;;  %s194_s28 = sshll.u32 %s331_s27, 4  ;;  %s195_s28 = int_to_ptr.vmem [resolvable:$true] %s194_s28 }
  0x2a   :  { %s297_s3 = scalar_lea.vmem %s195_s28, 128  ;;  %p302_p2 = scmp.lt.s32.totalorder %s195_s28, %s195_s28 }
  0x2b   :  { %p298_p1 = scmp.ne.s32.totalorder %s195_s28, %s297_s3  ;;  %p303_p3 = scmp.lt.s32.totalorder %s297_s3, %s297_s3 }
  0x2d   :  { %p304_p4 = por %p303_p3, %p302_p2 }
  0x2e   :  { %v234_v26 = vpop.eup %233 }
  0x2f   :  { %v236_v28 = vpop.eup %235  ;;  %v87_v29 = vmul.f32 0.6931472, %v234_v26  ;;  %p305_p5 = pnand %p304_p4, %p298_p1 }
  0x30   :  { %v89_v31 = vmul.f32 0.6931472, %v236_v28 }
  0x31   :  { %v108_v32 = vmul.f32 %v106_v27, %v87_v29 }
  0x32   :  { %v109_v33 = vmul.f32 %v107_v30, %v89_v31 }
  0x34   :  { %v114_v34 = vadd.f32 %v109_v33, %v108_v32 }
  0x36   :  { %118 = vst [vmem:[#allocation7] sm:$0xff] %v114_v34 }
  0x37   :  { %308 = shalt.err (!%p305_p5)
}
  0x38   :  { %197 = dma.vmem_to_hbm [thread:$0]  %s195_s28, 128, %s372_s2, [#allocation4]  }
  0x39   :  { %321 = dma.done.wait [#allocation4], 128  }
  0x3a   :  { %322 = vsyncadd [#allocation4], 4294967168 }
  0x3b   :  { %323 = dma.done.wait [#allocation9], 128  }
  0x3c   :  { %324 = vsyncadd [#allocation9], 4294967168 }
  0x3d   :  { %214 = vsyncpa [#allocation3], 1 }
  0x3e   :  { %215 = vsyncpa [#allocation6], 1 }
  0x3f   :  { %216 = vsyncpa [#allocation4], 1 }
  0x40   :  { %217 = vsyncpa [#allocation9], 1 }

</bundles_post_ra>
